<compile_context>
chip_gen: v6e
topology: v6e:2x2x1
jax: 0.10.0
libtpu: 0.0.40
codegen_flags: <defaults>
</compile_context>

<pallas_src>
import jax
import jax.numpy as jnp
from jax.experimental import pallas as pl
from jax.experimental.pallas import tpu as pltpu


def neumf_kernel(x_blk_ref, x_all_ref, w_ref, w2_ref, w3t_ref, w3b_ref, out_ref):
    d = w_ref.shape[1]

    w_bf = w_ref[...].astype(jnp.bfloat16)

    # ----- encode: z = x @ W (bf16 operands, f32 accumulation on the MXU) -----
    z_blk = jnp.dot(x_blk_ref[...].astype(jnp.bfloat16), w_bf,
                    preferred_element_type=jnp.float32)            # (TM, D)
    z_all = jnp.dot(x_all_ref[...].astype(jnp.bfloat16), w_bf,
                    preferred_element_type=jnp.float32)            # (N, D)

    r_blk = jnp.maximum(z_blk, 0.0).astype(jnp.bfloat16)           # relu(z) block
    r_all = jnp.maximum(z_all, 0.0).astype(jnp.bfloat16)           # relu(z) all rows

    w2_bf = w2_ref[...].astype(jnp.bfloat16)                       # (2D, D)
    w3t_bf = w3t_ref[...].astype(jnp.bfloat16)                     # (D, 1)

    # Collapsed pairwise projections (exact):
    #   u = W2[:D] @ W3[:D],  v = W2[D:] @ W3[:D]
    u = jnp.dot(w2_bf[:d, :], w3t_bf, preferred_element_type=jnp.float32)   # (D, 1)
    v = jnp.dot(w2_bf[d:, :], w3t_bf, preferred_element_type=jnp.float32)   # (D, 1)

    # a[i] = relu(z_i) . u  -> column, broadcast over output columns.
    a_col = jnp.dot(r_blk, u.astype(jnp.bfloat16),
                    preferred_element_type=jnp.float32)            # (TM, 1)
    # b[j] = relu(z_j) . v  -> row, broadcast over output rows.
    b_row = jnp.dot(r_all, v.astype(jnp.bfloat16),
                    preferred_element_type=jnp.float32).T          # (1, N)

    # M[i, j] = sum_k z_i[k] * W3[D+k] * z_j[k]  -> dense (TM, N) MXU matmul.
    lhs = (z_blk * w3b_ref[...]).astype(jnp.bfloat16)              # (TM, D)
    m_blk = jnp.dot(lhs, z_all.astype(jnp.bfloat16).T,
                    preferred_element_type=jnp.float32)            # (TM, N)

    logits = a_col + b_row + m_blk                                 # (TM, N)

    # decode() applies sigmoid, forward() applies sigmoid again (as in torch).
    out_ref[...] = jax.nn.sigmoid(jax.nn.sigmoid(logits))


def neumf_feature_forward(x, w, w2, w3, *, block_m=256):
    n, f = x.shape
    d = w.shape[1]
    assert w2.shape == (2 * d, d) and w3.shape == (2 * d, 1)

    # Tile the output row space; degenerate single block at small N.
    tm = block_m if (n > block_m and n % block_m == 0) else n
    grid = (n // tm,)

    # Wrapper-side layout glue: split W3 into the (D,1) "pair" column and a
    # lane-dense (1,D) row for the element-wise-product term.
    w3_top = w3[:d, :]                 # (D, 1)
    w3_bot_row = w3[d:, :].T           # (1, D)

    out = pl.pallas_call(
        neumf_kernel,
        out_shape=jax.ShapeDtypeStruct((n, n), jnp.float32),
        grid=grid,
        in_specs=[
            pl.BlockSpec((tm, f), lambda i: (i, 0)),       # x rows of this block
            pl.BlockSpec((n, f), lambda i: (0, 0)),        # full x (for z_all)
            pl.BlockSpec((f, d), lambda i: (0, 0)),        # W
            pl.BlockSpec((2 * d, d), lambda i: (0, 0)),    # W2
            pl.BlockSpec((d, 1), lambda i: (0, 0)),        # W3[:D]
            pl.BlockSpec((1, d), lambda i: (0, 0)),        # W3[D:] as a row
        ],
        out_specs=pl.BlockSpec((tm, n), lambda i: (i, 0)),  # lane-dense (N,N) output
        compiler_params=pltpu.CompilerParams(
            dimension_semantics=("parallel",),
            vmem_limit_bytes=32 * 1024 * 1024,
        ),
    )(x, x, w, w2, w3_top, w3_bot_row)
    return out


# ---------------- deterministic parameter init (mirrors the torch inits) -------------
def xavier_init(key, in_dim, out_dim):
    # torch.nn.init.xavier_uniform_: bound = sqrt(6 / (fan_in + fan_out))
    bound = float(jnp.sqrt(6.0 / (in_dim + out_dim)))
    return jax.random.uniform(key, (in_dim, out_dim), jnp.float32, -bound, bound)


def kaiming_init(key, in_dim, out_dim):
    # nn.init.kaiming_uniform_(a=1, nonlinearity='sigmoid'): gain = 1,
    # fan_in = tensor.size(1) = out_dim, bound = gain * sqrt(3 / fan_in)
    bound = float(jnp.sqrt(3.0 / out_dim))
    return jax.random.uniform(key, (in_dim, out_dim), jnp.float32, -bound, bound)


def reference_forward(x, w, w2, w3):
    # pure-JAX (f32) reference of the torch forward for a sanity check
    z = x @ w
    n, _ = z.shape
    z1 = jnp.repeat(z, n, axis=0)
    z2 = jnp.tile(z, (n, 1))
    z_pair = jax.nn.relu(jnp.concatenate([z1, z2], axis=1)) @ w2
    logits = jnp.concatenate([z_pair, z1 * z2], axis=1) @ w3
    return jax.nn.sigmoid(jax.nn.sigmoid(logits.reshape(n, n)))


if __name__ == "__main__":
    # small shapes implied by the module: node_size N, input_dim F, hidden1_dim D
    N, F, D = 8, 16, 128

    key = jax.random.PRNGKey(0)
    kx, kw, kw2, kw3 = jax.random.split(key, 4)

    x = jax.random.normal(kx, (N, F), jnp.float32)          # node feature matrix
    w = xavier_init(kw, F, D)                                # layer.weight
    w2 = xavier_init(kw2, 2 * D, D)                          # layer.weight_two
    w3 = kaiming_init(kw3, 2 * D, 1)                         # layer.weight_three

    a_pred = jax.block_until_ready(neumf_feature_forward(x, w, w2, w3))

    assert a_pred.shape == (N, N)
    assert bool(jnp.all(jnp.isfinite(a_pred)))

    ref = reference_forward(x, w, w2, w3)
    max_err = float(jnp.max(jnp.abs(a_pred - ref)))
    assert bool(jnp.allclose(a_pred, ref, rtol=0.0, atol=2e-2)), max_err

    print("KERNEL_OK")
</pallas_src>

<mosaic_0001>
module attributes {stable_mosaic.version = 11 : i64} {
  func.func @neumf_kernel(%arg0: i32, %arg1: memref<8x16xf32, #tpu.memory_space<vmem>>, %arg2: memref<8x16xf32, #tpu.memory_space<vmem>>, %arg3: memref<16x128xf32, #tpu.memory_space<vmem>>, %arg4: memref<256x128xf32, #tpu.memory_space<vmem>>, %arg5: memref<128x1xf32, #tpu.memory_space<vmem>>, %arg6: memref<1x128xf32, #tpu.memory_space<vmem>>, %arg7: memref<8x8xf32, #tpu.memory_space<vmem>>) attributes {dimension_semantics = [#tpu.dimension_semantics<parallel>], iteration_bounds = array<i64: 1>, scalar_prefetch = 0 : i64, scratch_operands = 0 : i64, tpu.core_type = #tpu.core_type<tc>, window_params = [{transform_indices = @transform_0, window_bounds = array<i64: 8, 16>}, {pipeline_mode = #tpu.pipeline_mode<synchronous>, transform_indices = @transform_1, window_bounds = array<i64: 8, 16>}, {pipeline_mode = #tpu.pipeline_mode<synchronous>, transform_indices = @transform_2, window_bounds = array<i64: 16, 128>}, {pipeline_mode = #tpu.pipeline_mode<synchronous>, transform_indices = @transform_3, window_bounds = array<i64: 256, 128>}, {pipeline_mode = #tpu.pipeline_mode<synchronous>, transform_indices = @transform_4, window_bounds = array<i64: 128, 1>}, {pipeline_mode = #tpu.pipeline_mode<synchronous>, transform_indices = @transform_5, window_bounds = array<i64: 1, 128>}, {transform_indices = @transform_6, window_bounds = array<i64: 8, 8>}]} {
    %c0 = arith.constant 0 : index
    %c0_0 = arith.constant 0 : index
    %0 = vector.load %arg3[%c0, %c0_0] : memref<16x128xf32, #tpu.memory_space<vmem>>, vector<16x128xf32>
    %1 = arith.truncf %0 : vector<16x128xf32> to vector<16x128xbf16>
    %c0_1 = arith.constant 0 : index
    %c0_2 = arith.constant 0 : index
    %2 = vector.load %arg1[%c0_1, %c0_2] : memref<8x16xf32, #tpu.memory_space<vmem>>, vector<8x16xf32>
    %3 = arith.truncf %2 : vector<8x16xf32> to vector<8x16xbf16>
    %cst = arith.constant dense<0.000000e+00> : vector<8x128xf32>
    %4 = tpu.matmul %3, %1, %cst {dimension_numbers = #tpu.dot_dimension_numbers<[1], [0], [0], [1], [0, 0, 1, 1], [], []>} : vector<8x16xbf16>, vector<16x128xbf16>, vector<8x128xf32> -> vector<8x128xf32>
    %c0_3 = arith.constant 0 : index
    %c0_4 = arith.constant 0 : index
    %5 = vector.load %arg2[%c0_3, %c0_4] : memref<8x16xf32, #tpu.memory_space<vmem>>, vector<8x16xf32>
    %6 = arith.truncf %5 : vector<8x16xf32> to vector<8x16xbf16>
    %cst_5 = arith.constant dense<0.000000e+00> : vector<8x128xf32>
    %7 = tpu.matmul %6, %1, %cst_5 {dimension_numbers = #tpu.dot_dimension_numbers<[1], [0], [0], [1], [0, 0, 1, 1], [], []>} : vector<8x16xbf16>, vector<16x128xbf16>, vector<8x128xf32> -> vector<8x128xf32>
    %cst_6 = arith.constant 0.000000e+00 : f32
    %8 = vector.broadcast %cst_6 : f32 to vector<8x128xf32>
    %9 = arith.maximumf %4, %8 : vector<8x128xf32>
    %10 = arith.truncf %9 : vector<8x128xf32> to vector<8x128xbf16>
    %cst_7 = arith.constant 0.000000e+00 : f32
    %11 = vector.broadcast %cst_7 : f32 to vector<8x128xf32>
    %12 = arith.maximumf %7, %11 : vector<8x128xf32>
    %13 = arith.truncf %12 : vector<8x128xf32> to vector<8x128xbf16>
    %c0_8 = arith.constant 0 : index
    %c0_9 = arith.constant 0 : index
    %14 = vector.load %arg4[%c0_8, %c0_9] : memref<256x128xf32, #tpu.memory_space<vmem>>, vector<256x128xf32>
    %15 = arith.truncf %14 : vector<256x128xf32> to vector<256x128xbf16>
    %c0_10 = arith.constant 0 : index
    %c0_11 = arith.constant 0 : index
    %16 = vector.load %arg5[%c0_10, %c0_11] : memref<128x1xf32, #tpu.memory_space<vmem>>, vector<128x1xf32>
    %17 = arith.truncf %16 : vector<128x1xf32> to vector<128x1xbf16>
    %18 = vector.extract_strided_slice %15 {offsets = [0, 0], sizes = [128, 128], strides = [1, 1]} : vector<256x128xbf16> to vector<128x128xbf16>
    %cst_12 = arith.constant dense<0.000000e+00> : vector<128x1xf32>
    %19 = tpu.matmul %18, %17, %cst_12 {dimension_numbers = #tpu.dot_dimension_numbers<[1], [0], [0], [1], [0, 0, 1, 1], [], []>} : vector<128x128xbf16>, vector<128x1xbf16>, vector<128x1xf32> -> vector<128x1xf32>
    %20 = vector.extract_strided_slice %15 {offsets = [128, 0], sizes = [128, 128], strides = [1, 1]} : vector<256x128xbf16> to vector<128x128xbf16>
    %cst_13 = arith.constant dense<0.000000e+00> : vector<128x1xf32>
    %21 = tpu.matmul %20, %17, %cst_13 {dimension_numbers = #tpu.dot_dimension_numbers<[1], [0], [0], [1], [0, 0, 1, 1], [], []>} : vector<128x128xbf16>, vector<128x1xbf16>, vector<128x1xf32> -> vector<128x1xf32>
    %22 = arith.truncf %19 : vector<128x1xf32> to vector<128x1xbf16>
    %cst_14 = arith.constant dense<0.000000e+00> : vector<8x1xf32>
    %23 = tpu.matmul %10, %22, %cst_14 {dimension_numbers = #tpu.dot_dimension_numbers<[1], [0], [0], [1], [0, 0, 1, 1], [], []>} : vector<8x128xbf16>, vector<128x1xbf16>, vector<8x1xf32> -> vector<8x1xf32>
    %24 = arith.truncf %21 : vector<128x1xf32> to vector<128x1xbf16>
    %cst_15 = arith.constant dense<0.000000e+00> : vector<8x1xf32>
    %25 = tpu.matmul %13, %24, %cst_15 {dimension_numbers = #tpu.dot_dimension_numbers<[1], [0], [0], [1], [0, 0, 1, 1], [], []>} : vector<8x128xbf16>, vector<128x1xbf16>, vector<8x1xf32> -> vector<8x1xf32>
    %26 = tpu.transpose %25, [1, 0] : vector<8x1xf32> -> vector<1x8xf32>
    %c0_16 = arith.constant 0 : index
    %c0_17 = arith.constant 0 : index
    %27 = vector.load %arg6[%c0_16, %c0_17] : memref<1x128xf32, #tpu.memory_space<vmem>>, vector<1x128xf32>
    %28 = vector.broadcast %27 : vector<1x128xf32> to vector<8x128xf32>
    %29 = arith.mulf %4, %28 : vector<8x128xf32>
    %30 = arith.truncf %29 : vector<8x128xf32> to vector<8x128xbf16>
    %31 = arith.truncf %7 : vector<8x128xf32> to vector<8x128xbf16>
    %32 = tpu.transpose %31, [1, 0] : vector<8x128xbf16> -> vector<128x8xbf16>
    %cst_18 = arith.constant dense<0.000000e+00> : vector<8x8xf32>
    %33 = tpu.matmul %30, %32, %cst_18 {dimension_numbers = #tpu.dot_dimension_numbers<[1], [0], [0], [1], [0, 0, 1, 1], [], []>} : vector<8x128xbf16>, vector<128x8xbf16>, vector<8x8xf32> -> vector<8x8xf32>
    %34 = vector.broadcast %23 : vector<8x1xf32> to vector<8x8xf32>
    %35 = vector.broadcast %26 : vector<1x8xf32> to vector<8x8xf32>
    %36 = arith.addf %34, %35 : vector<8x8xf32>
    %37 = arith.addf %36, %33 : vector<8x8xf32>
    %38 = arith.negf %37 : vector<8x8xf32>
    %39 = math.exp %38 : vector<8x8xf32>
    %cst_19 = arith.constant 1.000000e+00 : f32
    %40 = vector.broadcast %cst_19 : f32 to vector<8x8xf32>
    %41 = arith.addf %40, %39 : vector<8x8xf32>
    %42 = arith.divf %40, %41 : vector<8x8xf32>
    %43 = arith.negf %42 : vector<8x8xf32>
    %44 = math.exp %43 : vector<8x8xf32>
    %cst_20 = arith.constant 1.000000e+00 : f32
    %45 = vector.broadcast %cst_20 : f32 to vector<8x8xf32>
    %46 = arith.addf %45, %44 : vector<8x8xf32>
    %47 = arith.divf %45, %46 : vector<8x8xf32>
    %c0_21 = arith.constant 0 : index
    %c0_22 = arith.constant 0 : index
    %48 = vector.load %arg7[%c0_21, %c0_22] : memref<8x8xf32, #tpu.memory_space<vmem>>, vector<8x8xf32>
    tpu.vector_store %arg7[%c0_21, %c0_22], %47 {strides = array<i32>} : memref<8x8xf32, #tpu.memory_space<vmem>>, vector<8x8xf32>,
    return
  }
  func.func @transform_0(%arg0: i32) -> (i32, i32) {
    %c0_i32 = arith.constant 0 : i32
    %c0_i32_0 = arith.constant 0 : i32
    return %arg0, %c0_i32 : i32, i32
  }
  func.func @transform_1(%arg0: i32) -> (i32, i32) {
    %c0_i32 = arith.constant 0 : i32
    %c0_i32_0 = arith.constant 0 : i32
    %c0_i32_1 = arith.constant 0 : i32
    return %c0_i32, %c0_i32_0 : i32, i32
  }
  func.func @transform_2(%arg0: i32) -> (i32, i32) {
    %c0_i32 = arith.constant 0 : i32
    %c0_i32_0 = arith.constant 0 : i32
    %c0_i32_1 = arith.constant 0 : i32
    return %c0_i32, %c0_i32_0 : i32, i32
  }
  func.func @transform_3(%arg0: i32) -> (i32, i32) {
    %c0_i32 = arith.constant 0 : i32
    %c0_i32_0 = arith.constant 0 : i32
    %c0_i32_1 = arith.constant 0 : i32
    return %c0_i32, %c0_i32_0 : i32, i32
  }
  func.func @transform_4(%arg0: i32) -> (i32, i32) {
    %c0_i32 = arith.constant 0 : i32
    %c0_i32_0 = arith.constant 0 : i32
    %c0_i32_1 = arith.constant 0 : i32
    return %c0_i32, %c0_i32_0 : i32, i32
  }
  func.func @transform_5(%arg0: i32) -> (i32, i32) {
    %c0_i32 = arith.constant 0 : i32
    %c0_i32_0 = arith.constant 0 : i32
    %c0_i32_1 = arith.constant 0 : i32
    return %c0_i32, %c0_i32_0 : i32, i32
  }
  func.func @transform_6(%arg0: i32) -> (i32, i32) {
    %c0_i32 = arith.constant 0 : i32
    %c0_i32_0 = arith.constant 0 : i32
    return %arg0, %c0_i32 : i32, i32
  }
}

</mosaic_0001>

<bundles_post_ra>
// kernel: tpu_custom_call.1
= control target key start
LH: loop header
LB: loop body
LE: loop exit
PB: predicated region body
PF: predicated region fallthrough
CT: control target
= control target key end

     0   :  { %11 = vsyncpa [#allocation3], 0  ;;  %s1037_s0 = inlined_call_operand.vmem [shape: f32[8,16], index: 0, kind: input, shape index: {}]   ;;  %s1038_s1 = inlined_call_operand.vmem [shape: f32[8,16], index: 1, kind: input, shape index: {}]   ;;  %s1039_s2 = inlined_call_operand.vmem [shape: f32[16,128], index: 2, kind: input, shape index: {}]   ;;  %s1040_s3 = inlined_call_operand.hbm [shape: f32[256,128], index: 3, kind: input, shape index: {}]   ;;  %s1041_s4 = inlined_call_operand.vmem [shape: f32[128,1], index: 4, kind: input, shape index: {}]   ;;  %s1042_s5 = inlined_call_operand.vmem [shape: f32[1,128], index: 5, kind: input, shape index: {}]   ;;  %s1043_s6 = inlined_call_operand.hbm [shape: f32[8,8], index: 6, kind: output, shape index: {}]  }
   0x1   :  { %12 = vsyncpa [#allocation4], 0  ;;  %s864_s21 = smov [#allocation2]  }
   0x2   :  { %s24_s22 = sshll.u32 %s864_s21, 4  ;;  %s25_s22 = int_to_ptr.vmem [resolvable:$true] %s24_s22 }
   0x3   :  { %s828_s23 = scalar_lea.vmem %s25_s22, 4096  ;;  %p833_p1 = scmp.lt.s32.totalorder %s25_s22, %s25_s22 }
   0x4   :  { %p829_p0 = scmp.ne.s32.totalorder %s25_s22, %s828_s23  ;;  %p834_p2 = scmp.lt.s32.totalorder %s828_s23, %s828_s23 }
   0x6   :  { %p835_p3 = por %p834_p2, %p833_p1 }
   0x8   :  { %p836_p4 = pnand %p835_p3, %p829_p0 }
   0xa   :  { %839 = shalt.err (!%p836_p4)
}
   0xb   :  { %s865_s24 = smov 128   ;;  %s866_s25 = smov 8  }
   0xc   :  { %30 = dma.hbm_to_vmem [thread:$0]  %s1040_s3, 4096, %s25_s22, [#allocation3], %s865_s24, %s865_s24, %s866_s25  }
   0xd   :  { %860 = dma.done.wait [#allocation3], 4096  }
   0xe   :  { %861 = vsyncadd [#allocation3], 4294963200  ;;  %v867_v0 = vmov 0.0   ;;  %vm868_vm0 = vmmov 0   ;;  %v39_v1 = vld [vmem:[%s1039_s2] sm:$0xff]  ;;  %v40_v2 = vld [vmem:[%s1039_s2 + $0x8] sm:$0xff] }
   0xf   :  { %682 = vmatprep.subr.bf16.mxu0 %v867_v0  ;;  %688 = vmatprep.subr.bf16.mxu1 %v867_v0  ;;  %v42_v3 = vld [vmem:[%s1037_s0] sm:$0xff]  ;;  %v41_v4 = vpack.c.bf16 %v40_v2, %v39_v1  ;;  %v199_v5 = vld [vmem:[%s1041_s4 + $0x70] sm:$0xff]  ;;  %v200_v6 = vld [vmem:[%s1041_s4 + $0x78] sm:$0xff]  ;;  %vm44_vm1 = vcmask 130048   ;;  %vm604_vm2 = vcmask 64512  }
  0x10   :  { %684 = vmatprep.mubr.msk.bf16.mxu0 %vm868_vm0, %v867_v0  ;;  %690 = vmatprep.mubr.msk.bf16.mxu1 %vm868_vm0, %v867_v0  ;;  %v88_v7 = vld [vmem:[%s1038_s1] sm:$0xff]  ;;  %v43_v8 = vpack.c.bf16 %v42_v3, %v42_v3  ;;  %v208_v9 = vpack.c.bf16 %v200_v6, %v199_v5  ;;  %v198_v12 = vld [vmem:[%s1041_s4 + $0x68] sm:$0xff]  ;;  %v195_v14 = vld [vmem:[%s1041_s4 + $0x50] sm:$0xff] }
  0x11   :  { %v89_v10 = vpack.c.bf16 %v88_v7, %v88_v7  ;;  %v197_v11 = vld [vmem:[%s1041_s4 + $0x60] sm:$0xff]  ;;  %683 = vmatpush3.bf16.msra.mxu0 %v41_v4  ;;  %689 = vmatpush3.bf16.msra.mxu1 %v41_v4  ;;  %v196_v15 = vld [vmem:[%s1041_s4 + $0x58] sm:$0xff]  ;;  %v138_v17 = vld [vmem:[#allocation2 + $0x8] sm:$0xff] }
  0x12   :  { %694 = vmatprep.subr.bf16.mxu0 %v208_v9  ;;  %726 = vmatprep.subr.bf16.mxu1 %v208_v9  ;;  %v207_v13 = vpack.c.bf16 %v198_v12, %v197_v11  ;;  %v137_v16 = vld [vmem:[#allocation2] sm:$0xff]  ;;  %v154_v19 = vld [vmem:[#allocation2 + $0x88] sm:$0xff]  ;;  %v206_v20 = vpack.c.bf16 %v196_v15, %v195_v14  ;;  %v191_v26 = vld [vmem:[%s1041_s4 + $0x30] sm:$0xff] }
  0x13   :  { %v153_v18 = vld [vmem:[#allocation2 + $0x80] sm:$0xff]  ;;  %v169_v21 = vpack.c.bf16 %v138_v17, %v137_v16  ;;  %v194_v24 = vld [vmem:[%s1041_s4 + $0x48] sm:$0xff]  ;;  %v192_v27 = vld [vmem:[%s1041_s4 + $0x38] sm:$0xff]  ;;  %v869_v17 = vmov 0  }
  0x14   :  { %685 = vmatmul.mubr.msk.bf16.vlgmr.msra.gmra.mxu0 %vm44_vm1, %v43_v8  ;;  %691 = vmatmul.mubr.msk.bf16.vlgmr.msra.gmra.mxu1 %vm44_vm1, %v89_v10  ;;  %v177_v22 = vpack.c.bf16 %v154_v19, %v153_v18  ;;  %v193_v23 = vld [vmem:[%s1041_s4 + $0x40] sm:$0xff]  ;;  %v204_v28 = vpack.c.bf16 %v192_v27, %v191_v26  ;;  %v190_v30 = vld [vmem:[%s1041_s4 + $0x28] sm:$0xff]  ;;  %v187_v32 = vld [vmem:[%s1041_s4 + $0x10] sm:$0xff] }
  0x15   :  { %695 = vmatpush3.bf16.msra.mxu0 %v208_v9  ;;  %727 = vmatpush3.bf16.msra.mxu1 %v208_v9  ;;  %v205_v25 = vpack.c.bf16 %v194_v24, %v193_v23  ;;  %v189_v29 = vld [vmem:[%s1041_s4 + $0x20] sm:$0xff]  ;;  %v188_v33 = vld [vmem:[%s1041_s4 + $0x18] sm:$0xff]  ;;  %v186_v36 = vld [vmem:[%s1041_s4 + $0x8] sm:$0xff] }
  0x16   :  { %696 = vmatprep.subr.bf16.mxu0 %v207_v13  ;;  %728 = vmatprep.subr.bf16.mxu1 %v207_v13  ;;  %v203_v31 = vpack.c.bf16 %v190_v30, %v189_v29  ;;  %v202_v34 = vpack.c.bf16 %v188_v33, %v187_v32  ;;  %v185_v35 = vld [vmem:[%s1041_s4] sm:$0xff]  ;;  %v139_v38 = vld [vmem:[#allocation2 + $0x10] sm:$0xff]  ;;  %v140_v39 = vld [vmem:[#allocation2 + $0x18] sm:$0xff] }
  0x17   :  { %710 = vmatprep.mubr.bf16.mxu0 %v169_v21  ;;  %742 = vmatprep.mubr.bf16.mxu1 %v177_v22  ;;  %v201_v37 = vpack.c.bf16 %v186_v36, %v185_v35  ;;  %v155_v40 = vld [vmem:[#allocation2 + $0x90] sm:$0xff]  ;;  %v156_v41 = vld [vmem:[#allocation2 + $0x98] sm:$0xff]  ;;  %v141_v42 = vld [vmem:[#allocation2 + $0x20] sm:$0xff]  ;;  %v170_v46 = vpack.c.bf16 %v140_v39, %v139_v38 }
  0x18   :  { %v142_v43 = vld [vmem:[#allocation2 + $0x28] sm:$0xff]  ;;  %v157_v44 = vld [vmem:[#allocation2 + $0xa0] sm:$0xff]  ;;  %v178_v47 = vpack.c.bf16 %v156_v41, %v155_v40  ;;  %v143_v50 = vld [vmem:[#allocation2 + $0x30] sm:$0xff]  ;;  %811 = vset.pattern.permute.xlu0 %v869_v17 }
  0x19   :  { %697 = vmatpush3.bf16.msra.mxu0 %v207_v13  ;;  %729 = vmatpush3.bf16.msra.mxu1 %v207_v13  ;;  %v158_v45 = vld [vmem:[#allocation2 + $0xa8] sm:$0xff]  ;;  %v171_v48 = vpack.c.bf16 %v142_v43, %v141_v42  ;;  %v144_v51 = vld [vmem:[#allocation2 + $0x38] sm:$0xff]  ;;  %v159_v52 = vld [vmem:[#allocation2 + $0xb0] sm:$0xff] }
  0x1a   :  { %698 = vmatprep.subr.bf16.mxu0 %v206_v20  ;;  %730 = vmatprep.subr.bf16.mxu1 %v206_v20  ;;  %v179_v49 = vpack.c.bf16 %v158_v45, %v157_v44  ;;  %v160_v53 = vld [vmem:[#allocation2 + $0xb8] sm:$0xff]  ;;  %v145_v54 = vld [vmem:[#allocation2 + $0x40] sm:$0xff]  ;;  %v146_v55 = vld [vmem:[#allocation2 + $0x48] sm:$0xff]  ;;  %v172_v58 = vpack.c.bf16 %v144_v51, %v143_v50 }
  0x1b   :  { %v161_v56 = vld [vmem:[#allocation2 + $0xc0] sm:$0xff]  ;;  %v162_v57 = vld [vmem:[#allocation2 + $0xc8] sm:$0xff]  ;;  %v180_v59 = vpack.c.bf16 %v160_v53, %v159_v52  ;;  %v173_v60 = vpack.c.bf16 %v146_v55, %v145_v54  ;;  %v147_v62 = vld [vmem:[#allocation2 + $0x50] sm:$0xff] }
  0x1c   :  { %v181_v61 = vpack.c.bf16 %v162_v57, %v161_v56  ;;  %v148_v63 = vld [vmem:[#allocation2 + $0x58] sm:$0xff]  ;;  %v163_v1 = vld [vmem:[#allocation2 + $0xd0] sm:$0xff]  ;;  %v149_v3 = vld [vmem:[#allocation2 + $0x60] sm:$0xff] }
  0x1d   :  { %699 = vmatpush3.bf16.msra.mxu0 %v206_v20  ;;  %731 = vmatpush3.bf16.msra.mxu1 %v206_v20  ;;  %v164_v2 = vld [vmem:[#allocation2 + $0xd8] sm:$0xff]  ;;  %v150_v4 = vld [vmem:[#allocation2 + $0x68] sm:$0xff]  ;;  %v165_v5 = vld [vmem:[#allocation2 + $0xe0] sm:$0xff]  ;;  %v174_v7 = vpack.c.bf16 %v148_v63, %v147_v62 }
  0x1e   :  { %700 = vmatprep.subr.bf16.mxu0 %v205_v25  ;;  %732 = vmatprep.subr.bf16.mxu1 %v205_v25  ;;  %v166_v6 = vld [vmem:[#allocation2 + $0xe8] sm:$0xff]  ;;  %v182_v8 = vpack.c.bf16 %v164_v2, %v163_v1  ;;  %v175_v9 = vpack.c.bf16 %v150_v4, %v149_v3  ;;  %v151_v11 = vld [vmem:[#allocation2 + $0x70] sm:$0xff]  ;;  %v152_v12 = vld [vmem:[#allocation2 + $0x78] sm:$0xff] }
  0x1f   :  { %v183_v10 = vpack.c.bf16 %v166_v6, %v165_v5  ;;  %v167_v13 = vld [vmem:[#allocation2 + $0xf0] sm:$0xff]  ;;  %v168_v14 = vld [vmem:[#allocation2 + $0xf8] sm:$0xff]  ;;  %v176_v15 = vpack.c.bf16 %v152_v12, %v151_v11 }
  0x20   :  { %v184_v16 = vpack.c.bf16 %v168_v14, %v167_v13 }
  0x21   :  { %701 = vmatpush3.bf16.msra.mxu0 %v205_v25  ;;  %733 = vmatpush3.bf16.msra.mxu1 %v205_v25 }
  0x22   :  { %702 = vmatprep.subr.bf16.mxu0 %v204_v28  ;;  %734 = vmatprep.subr.bf16.mxu1 %v204_v28 }
  0x25   :  { %703 = vmatpush3.bf16.msra.mxu0 %v204_v28  ;;  %735 = vmatpush3.bf16.msra.mxu1 %v204_v28 }
  0x26   :  { %704 = vmatprep.subr.bf16.mxu0 %v203_v31  ;;  %736 = vmatprep.subr.bf16.mxu1 %v203_v31 }
  0x29   :  { %705 = vmatpush3.bf16.msra.mxu0 %v203_v31  ;;  %737 = vmatpush3.bf16.msra.mxu1 %v203_v31 }
  0x2a   :  { %706 = vmatprep.subr.bf16.mxu0 %v202_v34  ;;  %738 = vmatprep.subr.bf16.mxu1 %v202_v34 }
  0x2d   :  { %707 = vmatpush3.bf16.msra.mxu0 %v202_v34  ;;  %739 = vmatpush3.bf16.msra.mxu1 %v202_v34 }
  0x2e   :  { %708 = vmatprep.subr.bf16.mxu0 %v201_v37  ;;  %740 = vmatprep.subr.bf16.mxu1 %v201_v37 }
  0x31   :  { %709 = vmatpush3.bf16.msra.mxu0 %v201_v37  ;;  %741 = vmatpush3.bf16.msra.mxu1 %v201_v37 }
  0x32   :  { %758 = vmatprep.subr.bf16.mxu0 %v867_v0  ;;  %778 = vmatprep.subr.bf16.mxu1 %v867_v0 }
  0x34   :  { %711 = vmatmul.mubr.bf16.vlgmr.msra.gmra.mxu0 %v170_v46  ;;  %743 = vmatmul.mubr.bf16.vlgmr.msra.gmra.mxu1 %v178_v47 }
  0x35   :  { %714 = vmatprep.mubr.bf16.mxu0 %v171_v48  ;;  %746 = vmatprep.mubr.bf16.mxu1 %v179_v49 }
  0x3c   :  { %715 = vmatmul.mubr.bf16.gmra.mxu0 %v172_v58  ;;  %747 = vmatmul.mubr.bf16.gmra.mxu1 %v180_v59 }
  0x3d   :  { %718 = vmatprep.mubr.bf16.mxu0 %v173_v60  ;;  %750 = vmatprep.mubr.bf16.mxu1 %v181_v61 }
  0x44   :  { %719 = vmatmul.mubr.bf16.gmra.mxu0 %v174_v7  ;;  %751 = vmatmul.mubr.bf16.gmra.mxu1 %v182_v8 }
  0x45   :  { %722 = vmatprep.mubr.bf16.mxu0 %v175_v9  ;;  %754 = vmatprep.mubr.bf16.mxu1 %v183_v10 }
  0x4c   :  { %723 = vmatmul.mubr.bf16.gmra.mxu0 %v176_v15  ;;  %755 = vmatmul.mubr.bf16.gmra.mxu1 %v184_v16  ;;  %v623_v15 = vld [vmem:[%s1042_s5] ss:$0 sm:$0xff]  ;;  %s870_s5 = smov [#allocation5]  }
  0x4d   :  { %774 = vmatprep.mubr.msk.bf16.mxu0 %vm868_vm0, %v867_v0  ;;  %794 = vmatprep.mubr.msk.bf16.mxu1 %vm868_vm0, %v867_v0  ;;  %s612_s15 = sshll.u32 %s870_s5, 4  ;;  %s613_s15 = int_to_ptr.vmem [resolvable:$true] %s612_s15 }
  0x4e   :  { %s840_s0 = scalar_lea.vmem %s613_s15, 128  ;;  %p845_p6 = scmp.lt.s32.totalorder %s613_s15, %s613_s15 }
  0x4f   :  { %p841_p5 = scmp.ne.s32.totalorder %s613_s15, %s840_s0  ;;  %p846_p7 = scmp.lt.s32.totalorder %s840_s0, %s840_s0 }
  0x51   :  { %p847_p8 = por %p846_p7, %p845_p6 }
  0x53   :  { %p848_p9 = pnand %p847_p8, %p841_p5 }
  0xd4   :  { %v981_v18 = vpop.f32.mrf.mxu0  ;;  %v983_v19 = vpop.f32.mrf.mxu1 }
  0xd5   :  { %v133_v9 = vmax.f32 %v981_v18, 0.0  ;;  %v135_v10 = vmax.f32 %v983_v19, 0.0  ;;  %v540_v16 = vpack.c.bf16 %v983_v19, %v983_v19  ;;  %v538_v17 = vmul.f32 %v623_v15, %v981_v18 }
  0xd6   :  { %v686_v20 = vpop.f32.mrf.mxu0  ;;  %v692_v21 = vpop.f32.mrf.mxu1 }
  0xd7   :  { %v134_v13 = vpack.c.bf16 %v133_v9, %v133_v9  ;;  %v136_v14 = vpack.c.bf16 %v135_v10, %v135_v10  ;;  %v539_v20 = vpack.c.bf16 %v538_v17, %v538_v17 }
  0xd8   :  { %v85_v22 = vpop.f32.mrf.mxu0  ;;  %v130_v23 = vpop.f32.mrf.mxu1 }
  0xda   :  { %v687_v24 = vpop.f32.mrf.mxu0  ;;  %v693_v25 = vpop.f32.mrf.mxu1 }
  0xf4   :  { %v985_v26 = vpop.f32.mrf.mxu0  ;;  %v987_v27 = vpop.f32.mrf.mxu1 }
  0xf6   :  { %v989_v28 = vpop.f32.mrf.mxu0  ;;  %v991_v29 = vpop.f32.mrf.mxu1 }
  0xf8   :  { %v993_v30 = vpop.f32.mrf.mxu0  ;;  %v995_v31 = vpop.f32.mrf.mxu1 }
  0xf9   :  { %v404_v7 = vpack.c.bf16 %v993_v30, %v985_v26  ;;  %v452_v8 = vpack.c.bf16 %v995_v31, %v987_v27 }
  0xfa   :  { %v997_v32 = vpop.f32.mrf.mxu0  ;;  %v999_v33 = vpop.f32.mrf.mxu1 }
  0xfb   :  { %v403_v11 = vpack.c.bf16 %v997_v32, %v989_v28  ;;  %v451_v12 = vpack.c.bf16 %v999_v33, %v991_v29  ;;  %v586_v32 = vlaneseq }
  0xfc   :  { %v716_v34 = vpop.f32.mrf.mxu0  ;;  %v748_v35 = vpop.f32.mrf.mxu1 }
  0xfe   :  { %v259_v36 = vpop.f32.mrf.mxu0  ;;  %v356_v37 = vpop.f32.mrf.mxu1 }
 0x100   :  { %v717_v38 = vpop.f32.mrf.mxu0  ;;  %v749_v39 = vpop.f32.mrf.mxu1 }
 0x101   :  { %v406_v3 = vpack.c.bf16 %v717_v38, %v716_v34  ;;  %v454_v4 = vpack.c.bf16 %v749_v39, %v748_v35 }
 0x102   :  { %v262_v40 = vpop.f32.mrf.mxu0  ;;  %v359_v41 = vpop.f32.mrf.mxu1 }
 0x103   :  { %v405_v5 = vpack.c.bf16 %v262_v40, %v259_v36  ;;  %v453_v6 = vpack.c.bf16 %v359_v41, %v356_v37 }
 0x104   :  { %v720_v42 = vpop.f32.mrf.mxu0  ;;  %v752_v43 = vpop.f32.mrf.mxu1 }
 0x106   :  { %v275_v44 = vpop.f32.mrf.mxu0  ;;  %v372_v45 = vpop.f32.mrf.mxu1 }
 0x108   :  { %v721_v46 = vpop.f32.mrf.mxu0  ;;  %v753_v47 = vpop.f32.mrf.mxu1 }
 0x109   :  { %v456_v62 = vpack.c.bf16 %v753_v47, %v752_v43  ;;  %v408_v63 = vpack.c.bf16 %v721_v46, %v720_v42 }
 0x10a   :  { %v278_v48 = vpop.f32.mrf.mxu0  ;;  %v375_v49 = vpop.f32.mrf.mxu1 }
 0x10b   :  { %v455_v1 = vpack.c.bf16 %v375_v49, %v372_v45  ;;  %v407_v2 = vpack.c.bf16 %v278_v48, %v275_v44 }
 0x10c   :  { %v724_v50 = vpop.f32.mrf.mxu0  ;;  %v756_v51 = vpop.f32.mrf.mxu1 }
 0x10e   :  { %v291_v52 = vpop.f32.mrf.mxu0  ;;  %v388_v53 = vpop.f32.mrf.mxu1 }
 0x110   :  { %v725_v54 = vpop.f32.mrf.mxu0  ;;  %v757_v55 = vpop.f32.mrf.mxu1 }
 0x111   :  { %v410_v56 = vpack.c.bf16 %v725_v54, %v724_v50  ;;  %v458_v57 = vpack.c.bf16 %v757_v55, %v756_v51 }
 0x112   :  { %v294_v58 = vpop.f32.mrf.mxu0  ;;  %v391_v59 = vpop.f32.mrf.mxu1 }
 0x113   :  { %759 = vmatpush3.bf16.msra.mxu0 %v410_v56  ;;  %779 = vmatpush3.bf16.msra.mxu1 %v458_v57  ;;  %v457_v60 = vpack.c.bf16 %v391_v59, %v388_v53  ;;  %v409_v61 = vpack.c.bf16 %v294_v58, %v291_v52 }
 0x114   :  { %760 = vmatprep.subr.bf16.mxu0 %v867_v0  ;;  %780 = vmatprep.subr.bf16.mxu1 %v867_v0 }
 0x117   :  { %761 = vmatpush3.bf16.msra.mxu0 %v409_v61  ;;  %781 = vmatpush3.bf16.msra.mxu1 %v457_v60 }
 0x118   :  { %762 = vmatprep.subr.bf16.mxu0 %v867_v0  ;;  %782 = vmatprep.subr.bf16.mxu1 %v867_v0 }
 0x11b   :  { %763 = vmatpush3.bf16.msra.mxu0 %v408_v63  ;;  %783 = vmatpush3.bf16.msra.mxu1 %v456_v62 }
 0x11c   :  { %764 = vmatprep.subr.bf16.mxu0 %v867_v0  ;;  %784 = vmatprep.subr.bf16.mxu1 %v867_v0 }
 0x11f   :  { %765 = vmatpush3.bf16.msra.mxu0 %v407_v2  ;;  %785 = vmatpush3.bf16.msra.mxu1 %v455_v1 }
 0x120   :  { %766 = vmatprep.subr.bf16.mxu0 %v867_v0  ;;  %786 = vmatprep.subr.bf16.mxu1 %v867_v0 }
 0x123   :  { %767 = vmatpush3.bf16.msra.mxu0 %v406_v3  ;;  %787 = vmatpush3.bf16.msra.mxu1 %v454_v4 }
 0x124   :  { %768 = vmatprep.subr.bf16.mxu0 %v867_v0  ;;  %788 = vmatprep.subr.bf16.mxu1 %v867_v0 }
 0x127   :  { %769 = vmatpush3.bf16.msra.mxu0 %v405_v5  ;;  %789 = vmatpush3.bf16.msra.mxu1 %v453_v6 }
 0x128   :  { %770 = vmatprep.subr.bf16.mxu0 %v867_v0  ;;  %790 = vmatprep.subr.bf16.mxu1 %v867_v0 }
 0x12b   :  { %771 = vmatpush3.bf16.msra.mxu0 %v404_v7  ;;  %791 = vmatpush3.bf16.msra.mxu1 %v452_v8 }
 0x12c   :  { %772 = vmatprep.subr.bf16.mxu0 %v867_v0  ;;  %792 = vmatprep.subr.bf16.mxu1 %v867_v0 }
 0x12f   :  { %773 = vmatpush3.bf16.msra.mxu0 %v403_v11  ;;  %793 = vmatpush3.bf16.msra.mxu1 %v451_v12 }
 0x130   :  { %798 = vmatprep.subr.bf16.mxu0 %v867_v0 }
 0x132   :  { %775 = vmatmul.mubr.bf16.vlgmr.msra.gmra.mxu0 %v134_v13  ;;  %795 = vmatmul.mubr.bf16.vlgmr.msra.gmra.mxu1 %v136_v14 }
 0x133   :  { %799 = vmatpush3.bf16.xpose.msra.mxu0 %v540_v16  ;;  %800 = vmatprep.mubr.msk.bf16.mxu0 %vm868_vm0, %v867_v0  ;;  %v587_v0 = vshrl.u32 %v586_v32, 7 }
 0x135   :  { %v588_v18 = vsub.s32 0, %v587_v0 }
 0x13a   :  { %801 = vmatmul.mubr.bf16.vlgmr.msra.gmra.mxu0 %v539_v20 }
 0x1f2   :  { %v445_v21 = vpop.f32.mrf.mxu0  ;;  %v493_v22 = vpop.f32.mrf.mxu1 }
 0x1f3   :  { %583 = vperm.xlu0 %811, %v445_v21  }
 0x1f4   :  { %v776_v23 = vpop.f32.mrf.mxu0  ;;  %v796_v24 = vpop.f32.mrf.mxu1 }
 0x1f6   :  { %v448_v25 = vpop.f32.mrf.mxu0  ;;  %v496_v26 = vpop.f32.mrf.mxu1 }
 0x1f8   :  { %v777_v27 = vpop.f32.mrf.mxu0  ;;  %v797_v28 = vpop.f32.mrf.mxu1 }
 0x1fa   :  { %v575_v19 = vpop.f32.mrf.mxu0 }
 0x1fc   :  { %v802_v29 = vpop.f32.mrf.mxu0 }
 0x1fe   :  { %v578_v30 = vpop.f32.mrf.mxu0 }
 0x200   :  { %v803_v31 = vpop.f32.mrf.mxu0 }
 0x211   :  { %499 = vxpose.xlu0.b32.start.end [1/1] (short) (narrow) %v493_v22, 8 }
 0x26e   :  { %v584_v33 = vpop.permute.xlu0 %583 }
 0x28d   :  { %v515_v34 = vpop.trf.xlu0 }
 0x28e   :  { %v589_v35 = vrot.slane %v515_v34, %v588_v18 }
 0x290   :  { %v590_v36 = vadd.f32 %v589_v35, %v584_v33 }
 0x292   :  { %v591_v37 = vadd.f32 %v590_v36, %v575_v19 }
 0x294   :  { %v624_v38 = vmul.f32 -1.442695, %v591_v37 }
 0x296   :  { %812 = vpow2.f32 %v624_v38 }
 0x2a3   :  { %v813_v39 = vpop.eup %812 }
 0x2a4   :  { %v595_v40 = vadd.f32 1.0, %v813_v39 }
 0x2a6   :  { %814 = vrcp.f32 %v595_v40 }
 0x2b3   :  { %v815_v41 = vpop.eup %814 }
 0x2b4   :  { %v625_v42 = vmul.f32 -1.442695, %v815_v41 }
 0x2b6   :  { %816 = vpow2.f32 %v625_v42 }
 0x2c3   :  { %v817_v43 = vpop.eup %816 }
 0x2c4   :  { %v601_v44 = vadd.f32 1.0, %v817_v43 }
 0x2c6   :  { %818 = vrcp.f32 %v601_v44 }
 0x2d3   :  { %v819_v45 = vpop.eup %818 }
 0x2d4   :  { %605 = vst.msk [vmem:[#allocation5] sm:$0xff] %vm604_vm2, %v819_v45 }
 0x2d5   :  { %851 = shalt.err (!%p848_p9)
}
 0x2d6   :  { %615 = dma.vmem_to_hbm [thread:$0]  %s613_s15, 128, %s1043_s6, [#allocation4]  }
 0x2d7   :  { %862 = dma.done.wait [#allocation4], 128  }
 0x2d8   :  { %863 = vsyncadd [#allocation4], 4294967168 }
 0x2d9   :  { %619 = vsyncpa [#allocation3], 1 }
 0x2da   :  { %620 = vsyncpa [#allocation4], 1 }

</bundles_post_ra>
